<compile_context>
chip_gen: v5e
topology: v5e:2x2
jax: 0.10.0
libtpu: 0.0.40
codegen_flags: <defaults>
</compile_context>

<pallas_src>
import jax
import jax.numpy as jnp
from jax import lax
from jax.experimental import pallas as pl
from jax.experimental.pallas import tpu as pltpu


def _round_up(x: int, m: int) -> int:
    return (x + m - 1) // m * m


def _cdiv(a: int, b: int) -> int:
    return (a + b - 1) // b


def _vmem_capacity_bytes() -> int:
    try:
        return int(pltpu.get_tpu_info().vmem_capacity_bytes)
    except Exception:
        return 64 << 20  # conservative (v7x per-TensorCore)


# --------------------------------------------------------------------------------
# Kernels
# --------------------------------------------------------------------------------
def _fused_whole_kernel(b1_ref, w_ref, bias_ref, inp_ref, out_ref):
    """Single-block fast path: whole problem resident in VMEM, no K loop."""
    x = lax.dot_general(
        b1_ref[...], w_ref[...],
        dimension_numbers=(((1,), (0,)), ((), ())),   # (m,k) x (k,n)
        preferred_element_type=jnp.float32,
    )
    inp = inp_ref[...].astype(jnp.float32)
    # bias_ref already holds (bias + 1): (x + b + 1) * inp == (x + b) * inp + inp
    out_ref[...] = ((x + bias_ref[...]) * inp).astype(out_ref.dtype)


def _tiled_kernel_f32out(b1_ref, w_ref, bias_ref, inp_ref, out_ref):
    """Tiled path, f32 output: accumulate directly into the resident out block."""
    k = pl.program_id(2)

    @pl.when(k == 0)
    def _():
        out_ref[...] = jnp.zeros_like(out_ref)

    out_ref[...] += lax.dot_general(
        b1_ref[...], w_ref[...],
        dimension_numbers=(((1,), (0,)), ((), ())),
        preferred_element_type=jnp.float32,
    )

    @pl.when(k == pl.num_programs(2) - 1)
    def _():
        out_ref[...] = (out_ref[...] + bias_ref[...]) * inp_ref[...].astype(jnp.float32)


def _tiled_kernel_acc(b1_ref, w_ref, bias_ref, inp_ref, out_ref, acc_ref):
    """Tiled path, narrow output dtype: f32 scratch accumulator."""
    k = pl.program_id(2)

    @pl.when(k == 0)
    def _():
        acc_ref[...] = jnp.zeros_like(acc_ref)

    acc_ref[...] += lax.dot_general(
        b1_ref[...], w_ref[...],
        dimension_numbers=(((1,), (0,)), ((), ())),
        preferred_element_type=jnp.float32,
    )

    @pl.when(k == pl.num_programs(2) - 1)
    def _():
        inp = inp_ref[...].astype(jnp.float32)
        out_ref[...] = ((acc_ref[...] + bias_ref[...]) * inp).astype(out_ref.dtype)


# --------------------------------------------------------------------------------
# Tiling heuristics
# --------------------------------------------------------------------------------
def _select_tiles(M, N, K, isz_in, isz_out, budget):
    # Clamp tm/tn to the problem so small M (typical Linear) streams the weight once.
    tm = min(512, _round_up(M, 8))
    tn = min(512, _round_up(N, 128))
    tk_cap = 1024

    def tile_bytes(tm_, tn_, tk_):
        return (2 * tm_ * tk_ * isz_in       # batch1 (double-buffered)
                + 2 * tk_ * tn_ * isz_in     # weight.T (double-buffered)
                + 2 * tm_ * tn_ * isz_in     # input (double-buffered)
                + 2 * tm_ * tn_ * isz_out    # output
                + 2 * tn_ * 4                # bias
                + tm_ * tn_ * 4)             # accumulator / headroom

    while tile_bytes(tm, tn, min(tk_cap, _round_up(K, 128))) > budget:
        if tk_cap > 256:
            tk_cap //= 2
        elif tn > 128:
            tn //= 2
        elif tm > 8:
            tm //= 2
        else:
            break
    return tm, tn, tk_cap


# --------------------------------------------------------------------------------
# Wrapper
# --------------------------------------------------------------------------------
def addmm_1dbias_view_mul_add(inp, batch1, weight, bias, *, cast_operands_bf16=False):
    """out = ((batch1 @ weight.T + bias).reshape(inp.shape)) * inp + inp."""
    M, K = batch1.shape
    N, K2 = weight.shape
    assert K == K2, "weight in_features must match batch1 trailing dim"
    assert inp.size == M * N, ".view(input.size()) requires matching element counts"

    out_dtype = inp.dtype

    # Glue for torch's .view(input.size()) (row-major contiguity, as in torch).
    inp_2d = inp.reshape(M, N)

    # Fold the trailing "+ input" into the bias.
    bias_p1 = (bias.astype(jnp.float32) + 1.0).reshape(1, N)

    # One-time wrapper transpose -> canonical (m,k)x(k,n) orientation in the kernel.
    w_t = weight.T  # [K, N]
    b1 = batch1

    if cast_operands_bf16:
        # Optional: MXU bf16 peak + half the streamed bytes; accumulation stays f32.
        b1 = b1.astype(jnp.bfloat16)
        w_t = w_t.astype(jnp.bfloat16)

    isz_in = jnp.dtype(b1.dtype).itemsize
    isz_inp = jnp.dtype(inp.dtype).itemsize
    isz_out = jnp.dtype(out_dtype).itemsize

    # ---------------- small-shape fast path: single grid point, no padding --------
    total_bytes = (M * K + K * N) * isz_in + M * N * (isz_inp + isz_out) + N * 4
    if total_bytes <= (4 << 20):
        out2d = pl.pallas_call(
            _fused_whole_kernel,
            out_shape=jax.ShapeDtypeStruct((M, N), out_dtype),
            in_specs=[pl.BlockSpec(memory_space=pltpu.MemorySpace.VMEM)] * 4,
            out_specs=pl.BlockSpec(memory_space=pltpu.MemorySpace.VMEM),
        )(b1, w_t, bias_p1, inp_2d)
        return out2d.reshape(inp.shape)

    # ---------------- tiled, auto-pipelined path ----------------------------------
    phys_vmem = _vmem_capacity_bytes()
    budget = min(int(phys_vmem * 0.45), 48 << 20)
    tm, tn, tk_cap = _select_tiles(M, N, K, isz_in, isz_out, budget)

    Kp128 = _round_up(K, 128)
    if Kp128 <= tk_cap:
        tk, Kp = K, K                       # one K step; block spans full K, no pad
    else:
        nk = _cdiv(Kp128, tk_cap)
        tk = _round_up(_cdiv(Kp128, nk), 128)
        Kp = nk * tk

    # Only the reduction dimension needs explicit zero padding (zeros contribute 0
    # to the dot). Partial M / N blocks are handled by Pallas; their overhang only
    # touches output rows/cols that are never written back.
    if Kp != K:
        b1 = jnp.pad(b1, ((0, 0), (0, Kp - K)))
        w_t = jnp.pad(w_t, ((0, Kp - K), (0, 0)))

    grid = (_cdiv(M, tm), _cdiv(N, tn), Kp // tk)

    use_acc = out_dtype != jnp.float32
    kernel = _tiled_kernel_acc if use_acc else _tiled_kernel_f32out
    scratch = [pltpu.VMEM((tm, tn), jnp.float32)] if use_acc else []

    tile_bytes = (2 * tm * tk * isz_in + 2 * tk * tn * isz_in
                  + 2 * tm * tn * isz_inp + 2 * tm * tn * isz_out + 2 * tn * 4
                  + (tm * tn * 4 if use_acc else 0))
    vmem_limit = int(min(max(tile_bytes + (16 << 20), 32 << 20), int(phys_vmem * 0.85)))

    bytes_acc = (b1.size * b1.dtype.itemsize * grid[1]     # batch1 re-read per N block
                 + w_t.size * w_t.dtype.itemsize * grid[0]  # weight re-read per M block
                 + inp_2d.size * isz_inp
                 + bias_p1.size * 4
                 + M * N * isz_out)

    out2d = pl.pallas_call(
        kernel,
        out_shape=jax.ShapeDtypeStruct((M, N), out_dtype),
        grid_spec=pltpu.PrefetchScalarGridSpec(
            num_scalar_prefetch=0,
            grid=grid,
            in_specs=[
                pl.BlockSpec((tm, tk), lambda i, j, k: (i, k)),   # batch1   [M, Kp]
                pl.BlockSpec((tk, tn), lambda i, j, k: (k, j)),   # weight.T [Kp, N]
                pl.BlockSpec((1, tn), lambda i, j, k: (0, j)),    # bias + 1 [1, N]
                pl.BlockSpec((tm, tn), lambda i, j, k: (i, j)),   # input    [M, N]
            ],
            out_specs=pl.BlockSpec((tm, tn), lambda i, j, k: (i, j)),
            scratch_shapes=scratch,
        ),
        compiler_params=pltpu.CompilerParams(
            dimension_semantics=("parallel", "parallel", "arbitrary"),
            vmem_limit_bytes=vmem_limit,
        ),
        cost_estimate=pl.CostEstimate(
            flops=2 * M * N * Kp,
            transcendentals=0,
            bytes_accessed=int(bytes_acc),
        ),
    )(b1, w_t, bias_p1, inp_2d)

    return out2d.reshape(inp.shape)


if __name__ == "__main__":
    dtype = jnp.float32

    # ---- Case 1: the module's own tiny shapes (exercises the single-block fast path)
    K, N, M = 32, 32, 8
    k_w, k_b, k_in, k_b1 = jax.random.split(jax.random.PRNGKey(0), 4)
    weight = jax.random.normal(k_w, (N, K), dtype) * 0.1    # nn.Linear weight [out, in]
    bias = jax.random.normal(k_b, (N,), dtype) * 0.1        # nn.Linear bias [out]
    inp = jax.random.normal(k_in, (2, 4, N), dtype)          # 2*4*32 == 8*32 -> .view works
    batch1 = jax.random.normal(k_b1, (M, K), dtype)

    out = addmm_1dbias_view_mul_add(inp, batch1, weight, bias)
    out = jax.block_until_ready(out)

    ref = (batch1 @ weight.T + bias).reshape(inp.shape)
    ref = ref * inp + inp
    assert out.shape == inp.shape
    assert jnp.allclose(out, ref, atol=1e-5, rtol=1e-5), "small-shape mismatch"

    # ---- Case 2: larger shapes (exercises the tiled / pipelined path, K loop,
    #              partial M/N blocks and K-only zero padding)
    M2, N2, K2 = 384, 640, 1300
    k_w2, k_b2, k_in2, k_b12 = jax.random.split(jax.random.PRNGKey(1), 4)
    weight2 = jax.random.normal(k_w2, (N2, K2), dtype) * 0.05
    bias2 = jax.random.normal(k_b2, (N2,), dtype) * 0.1
    inp2 = jax.random.normal(k_in2, (2, M2 // 2, N2), dtype)
    batch12 = jax.random.normal(k_b12, (M2, K2), dtype)

    out2 = addmm_1dbias_view_mul_add(inp2, batch12, weight2, bias2)
    out2 = jax.block_until_ready(out2)

    ref2 = (jnp.dot(batch12, weight2.T, precision=lax.Precision.HIGHEST) + bias2)
    ref2 = ref2.reshape(inp2.shape) * inp2 + inp2
    assert out2.shape == inp2.shape
    assert jnp.allclose(out2, ref2, atol=5e-3, rtol=5e-3), "tiled-path mismatch"

    print("KERNEL_OK")
</pallas_src>

<mosaic_0001>
module attributes {stable_mosaic.version = 11 : i64} {
  func.func @_fused_whole_kernel(%arg0: memref<8x32xf32, #tpu.memory_space<vmem>>, %arg1: memref<32x32xf32, #tpu.memory_space<vmem>>, %arg2: memref<1x32xf32, #tpu.memory_space<vmem>>, %arg3: memref<8x32xf32, #tpu.memory_space<vmem>>, %arg4: memref<8x32xf32, #tpu.memory_space<vmem>>) attributes {dimension_semantics = [], scalar_prefetch = 0 : i64, scratch_operands = 0 : i64, tpu.core_type = #tpu.core_type<tc>} {
    %c0 = arith.constant 0 : index
    %c0_0 = arith.constant 0 : index
    %0 = vector.load %arg0[%c0, %c0_0] : memref<8x32xf32, #tpu.memory_space<vmem>>, vector<8x32xf32>
    %c0_1 = arith.constant 0 : index
    %c0_2 = arith.constant 0 : index
    %1 = vector.load %arg1[%c0_1, %c0_2] : memref<32x32xf32, #tpu.memory_space<vmem>>, vector<32x32xf32>
    %cst = arith.constant dense<0.000000e+00> : vector<8x32xf32>
    %2 = tpu.matmul %0, %1, %cst {dimension_numbers = #tpu.dot_dimension_numbers<[1], [0], [0], [1], [0, 0, 1, 1], [], []>} : vector<8x32xf32>, vector<32x32xf32>, vector<8x32xf32> -> vector<8x32xf32>
    %c0_3 = arith.constant 0 : index
    %c0_4 = arith.constant 0 : index
    %3 = vector.load %arg3[%c0_3, %c0_4] : memref<8x32xf32, #tpu.memory_space<vmem>>, vector<8x32xf32>
    %c0_5 = arith.constant 0 : index
    %c0_6 = arith.constant 0 : index
    %4 = vector.load %arg2[%c0_5, %c0_6] : memref<1x32xf32, #tpu.memory_space<vmem>>, vector<1x32xf32>
    %5 = vector.broadcast %4 : vector<1x32xf32> to vector<8x32xf32>
    %6 = arith.addf %2, %5 : vector<8x32xf32>
    %7 = arith.mulf %6, %3 : vector<8x32xf32>
    %c0_7 = arith.constant 0 : index
    %c0_8 = arith.constant 0 : index
    %8 = vector.load %arg4[%c0_7, %c0_8] : memref<8x32xf32, #tpu.memory_space<vmem>>, vector<8x32xf32>
    tpu.vector_store %arg4[%c0_7, %c0_8], %7 {strides = array<i32>} : memref<8x32xf32, #tpu.memory_space<vmem>>, vector<8x32xf32>,
    return
  }
}

</mosaic_0001>

<bundles_post_ra>
// kernel: tpu_custom_call.1
= control target key start
LH: loop header
LB: loop body
LE: loop exit
PB: predicated region body
PF: predicated region fallthrough
CT: control target
= control target key end

     0   :  { %9 = vsyncpa [#allocation3], 0  ;;  %s271_s0 = inlined_call_operand.hbm [shape: f32[8,32], index: 0, kind: input, shape index: {}]   ;;  %s272_s1 = inlined_call_operand.hbm [shape: f32[32,32], index: 1, kind: input, shape index: {}]   ;;  %s273_s2 = inlined_call_operand.vmem [shape: f32[1,32], index: 2, kind: input, shape index: {}]   ;;  %s274_s3 = inlined_call_operand.hbm [shape: f32[8,32], index: 3, kind: input, shape index: {}]   ;;  %s275_s4 = inlined_call_operand.hbm [shape: f32[8,32], index: 4, kind: output, shape index: {}]  }
   0x1   :  { %10 = vsyncpa [#allocation6], 0  ;;  %s27_s17 = sshll.u32 %s272_s1, 4  ;;  %s28_s17 = int_to_ptr.hbm [resolvable:$true] %s27_s17 }
   0x2   :  { %11 = vsyncpa [#allocation4], 0  ;;  %s225_s18 = smov [#allocation5]   ;;  %s17_s22 = sshll.u32 %s271_s0, 4  ;;  %s18_s22 = int_to_ptr.hbm [resolvable:$true] %s17_s22 }
   0x3   :  { %s29_s19 = sshll.u32 %s225_s18, 4  ;;  %s226_s23 = smov 128   ;;  %s30_s19 = int_to_ptr.vmem [resolvable:$true] %s29_s19 }
   0x4   :  { %s227_s24 = smov 8   ;;  %s228_s25 = smov [#allocation2]  }
   0x5   :  { %35 = dma.hbm_to_vmem [thread:$0]  %s28_s17, 512, %s30_s19, [#allocation6], %s226_s23, %s226_s23, %s227_s24  }
   0x6   :  { %s19_s26 = sshll.u32 %s228_s25, 4  ;;  %s43_s29 = sshll.u32 %s274_s3, 4  ;;  %s20_s26 = int_to_ptr.vmem [resolvable:$true] %s19_s26  ;;  %s44_s29 = int_to_ptr.hbm [resolvable:$true] %s43_s29 }
   0x7   :  { %22 = dma.hbm_to_vmem [thread:$0]  %s18_s22, 128, %s20_s26, [#allocation3]  }
   0x8   :  { %s229_s1 = smov [#allocation7]  }
   0x9   :  { %s45_s30 = sshll.u32 %s229_s1, 4  ;;  %s46_s30 = int_to_ptr.vmem [resolvable:$true] %s45_s30 }
   0xa   :  { %48 = dma.hbm_to_vmem [thread:$0]  %s44_s29, 128, %s46_s30, [#allocation6]  }
   0xb   :  { %219 = dma.done.wait [#allocation3], 128  }
   0xc   :  { %220 = vsyncadd [#allocation3], 4294967168 }
   0xd   :  { %221 = dma.done.wait [#allocation6], 640  }
   0xe   :  { %222 = vsyncadd [#allocation6], 4294966656  ;;  %v65_v0 = vld [vmem:[#allocation5 + $0x18] sm:$0xff]  ;;  %v64_v1 = vld [vmem:[#allocation5 + $0x10] sm:$0xff]  ;;  %vm71_vm0 = vcmask 261120   ;;  %s230_s5 = smov [#allocation8]  }
   0xf   :  { %87 = vmatpush.msra.mxu0 %v65_v0  ;;  %v63_v2 = vld [vmem:[#allocation5 + $0x8] sm:$0xff]  ;;  %v62_v3 = vld [vmem:[#allocation5] sm:$0xff]  ;;  %v61_v4 = vld [vmem:[#allocation2] sm:$0xff]  ;;  %s102_s6 = sshll.u32 %s230_s5, 4  ;;  %s104_s9 = sshll.u32 %s275_s4, 4  ;;  %s103_s6 = int_to_ptr.vmem [resolvable:$true] %s102_s6  ;;  %s105_s9 = int_to_ptr.hbm [resolvable:$true] %s104_s9 }
  0x10   :  { %v122_v5 = vld [vmem:[%s273_s2] ss:$0 sm:$0xff]  ;;  %v66_v6 = vld [vmem:[#allocation7] sm:$0xff] }
  0x11   :  { %88 = vmatpush.msra.mxu0 %v64_v1 }
  0x13   :  { %89 = vmatpush.msra.mxu0 %v63_v2 }
  0x15   :  { %90 = vmatpush.msra.mxu0 %v62_v3 }
  0x16   :  { %115 = vmatmul.msk.f32.vlgmr.msra.gmra.mxu0 %vm71_vm0, %v61_v4 }
  0x93   :  { %v92_v7 = vpop.f32.mrf.mxu0 }
  0x94   :  { %v93_v8 = vadd.f32 %v122_v5, %v92_v7 }
  0x96   :  { %v95_v9 = vmul.f32 %v93_v8, %v66_v6 }
  0x98   :  { %96 = vst.msk [vmem:[#allocation8] sm:$0xff] %vm71_vm0, %v95_v9 }
  0x99   :  { %107 = dma.vmem_to_hbm [thread:$0]  %s103_s6, 128, %s105_s9, [#allocation4]  }
  0x9a   :  { %223 = dma.done.wait [#allocation4], 128  }
  0x9b   :  { %224 = vsyncadd [#allocation4], 4294967168 }
  0x9c   :  { %112 = vsyncpa [#allocation3], 1 }
  0x9d   :  { %113 = vsyncpa [#allocation6], 1 }
  0x9e   :  { %114 = vsyncpa [#allocation4], 1 }

</bundles_post_ra>
